<compile_context>
chip_gen: v5e
topology: v5e:2x2
jax: 0.10.0
libtpu: 0.0.40
codegen_flags: <defaults>
</compile_context>

<pallas_src>
import functools

import jax
import jax.numpy as jnp
from jax.experimental import pallas as pl
from jax.experimental.pallas import tpu as pltpu

_EPS = 1e-12                      # F.normalize default eps
_VMEM_LIMIT = 32 * 1024 * 1024    # scoped-VMEM budget, safe on v5e/v6e/v7x
_MXU_DTYPE = jnp.bfloat16

_VMEM_SPEC = pl.BlockSpec(memory_space=pltpu.MemorySpace.VMEM)


# ---------------------------------------------------------------------------
# tiling helpers
# ---------------------------------------------------------------------------
def _pick_hw_tile(hw, cap=1024):
    """Largest lane-axis (HW) tile: full if small, else a divisor that is a multiple
    of 128 (keeps pooling / accumulation exact and stores unmasked)."""
    if hw <= cap:
        return hw
    for t in range(cap - cap % 128, 127, -128):
        if hw % t == 0:
            return t
    return hw


def _pick_col_splits(d_t, d_s, max_cols=2048):
    """Number of column tiles G so both flattened feature dims split into lane-aligned
    tiles of <= max_cols columns (used by the similarity-gram contraction)."""
    best = 1
    for g in range(1, min(d_t, d_s) + 1):
        if d_t % g or d_s % g:
            continue
        tt, ts = d_t // g, d_s // g
        if g > 1 and (tt % 128 or ts % 128):
            continue
        best = g
        if tt <= max_cols and ts <= max_cols:
            return g
    return best


# ---------------------------------------------------------------------------
# Pallas kernels
# ---------------------------------------------------------------------------
def _conv1x1_kernel(x_ref, w_ref, b_ref, o_ref):
    # per-image tile: (Cout, Cin) @ (Cin, t_hw) + (Cout, 1), lane-dense output.
    x = x_ref[0].astype(_MXU_DTYPE)
    w = w_ref[...].astype(_MXU_DTYPE)
    y = jnp.dot(w, x, preferred_element_type=jnp.float32) + b_ref[...]
    o_ref[0] = y.astype(o_ref.dtype)


def _conv_pool_head_kernel(x_ref, wc_ref, bc_ref, wh_ref, bh_ref,
                           feat_ref, logit_ref, acc_ref, *, inv_hw):
    # Fused conv1x1 + global-avg-pool + linear head. grid = (N, hw_tiles).
    j = pl.program_id(1)

    @pl.when(j == 0)
    def _():
        acc_ref[...] = jnp.zeros_like(acc_ref)

    x = x_ref[0].astype(_MXU_DTYPE)                       # (Cin, t_hw)
    w = wc_ref[...].astype(_MXU_DTYPE)                    # (Cout, Cin)
    y = jnp.dot(w, x, preferred_element_type=jnp.float32) + bc_ref[...]   # (Cout, t_hw)
    feat_ref[0] = y.astype(feat_ref.dtype)
    acc_ref[...] += jnp.sum(y, axis=-1, keepdims=True)    # (Cout, 1) pooled-sum accumulator

    @pl.when(j == pl.num_programs(1) - 1)
    def _():
        pooled = acc_ref[...] * inv_hw                    # (Cout, 1)
        logits = jnp.dot(wh_ref[...], pooled,
                         preferred_element_type=jnp.float32) + bh_ref[...]  # (K, 1)
        logit_ref[0] = logits


def _attention_loss_kernel(ft_ref, fs_ref, o_ref, st2_acc, ss2_acc, sts_acc):
    # attention_transform: a = mean_C(feat^2); MSE of L2-normalized a_t / a_s.
    # Per-row MSE sum = St2/mt^2 - 2*Sts/(mt*ms) + Ss2/ms^2, accumulated over HW tiles.
    j = pl.program_id(1)

    @pl.when(j == 0)
    def _():
        st2_acc[...] = jnp.zeros_like(st2_acc)
        ss2_acc[...] = jnp.zeros_like(ss2_acc)
        sts_acc[...] = jnp.zeros_like(sts_acc)

    ft = ft_ref[0]                                        # (Ct, t_hw) f32
    fs = fs_ref[0]                                        # (Cs, t_hw) f32
    at = jnp.mean(ft * ft, axis=0, keepdims=True)         # (1, t_hw)
    a_s = jnp.mean(fs * fs, axis=0, keepdims=True)        # (1, t_hw)
    st2_acc[...] += jnp.sum(at * at, axis=-1, keepdims=True)
    ss2_acc[...] += jnp.sum(a_s * a_s, axis=-1, keepdims=True)
    sts_acc[...] += jnp.sum(at * a_s, axis=-1, keepdims=True)

    @pl.when(j == pl.num_programs(1) - 1)
    def _():
        st2 = st2_acc[...]
        ss2 = ss2_acc[...]
        sts = sts_acc[...]
        nt = jnp.maximum(jnp.sqrt(st2), _EPS)
        ns = jnp.maximum(jnp.sqrt(ss2), _EPS)
        o_ref[0] = st2 / (nt * nt) - 2.0 * sts / (nt * ns) + ss2 / (ns * ns)


def _similarity_loss_kernel(ft_ref, fs_ref, o_ref, gt_acc, gs_acc):
    # similarity_transform: gram = feat @ feat.T (accumulated over flattened-feature tiles
    # via dot_general contracting the LAST axes of both operands -> no transpose), then
    # L2-normalize rows and take the MSE of the grams.
    k = pl.program_id(0)

    @pl.when(k == 0)
    def _():
        gt_acc[...] = jnp.zeros_like(gt_acc)
        gs_acc[...] = jnp.zeros_like(gs_acc)

    dn = (((1,), (1,)), ((), ()))
    ft = ft_ref[...].astype(_MXU_DTYPE)                   # (N, t_dt)
    fs = fs_ref[...].astype(_MXU_DTYPE)                   # (N, t_ds)
    gt_acc[...] += jax.lax.dot_general(ft, ft, dn, preferred_element_type=jnp.float32)
    gs_acc[...] += jax.lax.dot_general(fs, fs, dn, preferred_element_type=jnp.float32)

    @pl.when(k == pl.num_programs(0) - 1)
    def _():
        gt = gt_acc[...]
        gs = gs_acc[...]
        nt = jnp.maximum(jnp.sqrt(jnp.sum(gt * gt, axis=-1, keepdims=True)), _EPS)
        ns = jnp.maximum(jnp.sqrt(jnp.sum(gs * gs, axis=-1, keepdims=True)), _EPS)
        d = gt / nt - gs / ns
        o_ref[...] = jnp.sum(d * d, keepdims=True) * (1.0 / (gt.shape[0] * gt.shape[1]))


def _mse_loss_kernel(a_ref, b_ref, o_ref):
    # 'linear' transform is identity -> plain MSE; per-sample sum accumulated in the
    # resident output block, mean taken outside.
    j = pl.program_id(1)

    @pl.when(j == 0)
    def _():
        o_ref[...] = jnp.zeros_like(o_ref)

    d = a_ref[0] - b_ref[0]
    o_ref[0] += jnp.sum(d * d, keepdims=True)


def _soft_kl_kernel(lt_ref, ls_ref, o_ref, *, inv_t, scale):
    # KLDiv(log_softmax(s/T) || log_softmax(t/T), log_target=True, 'sum') * T^2 / numel
    zt = lt_ref[...].astype(jnp.float32) * inv_t
    zs = ls_ref[...].astype(jnp.float32) * inv_t
    lt = zt - jnp.max(zt, axis=1, keepdims=True)
    lt = lt - jnp.log(jnp.sum(jnp.exp(lt), axis=1, keepdims=True))
    ls = zs - jnp.max(zs, axis=1, keepdims=True)
    ls = ls - jnp.log(jnp.sum(jnp.exp(ls), axis=1, keepdims=True))
    kl = jnp.sum(jnp.exp(lt) * (lt - ls), keepdims=True)  # (1, 1)
    o_ref[...] = kl * scale


def _hard_ce_kernel(lt_ref, ls_ref, o_ref):
    # cross_entropy(logits_s, argmax(logits_t, dim=1)), mean over batch
    lt = lt_ref[...].astype(jnp.float32)
    ls = ls_ref[...].astype(jnp.float32)
    C = lt.shape[1]
    idx = jax.lax.broadcasted_iota(jnp.int32, lt.shape, 1)
    is_max = lt == jnp.max(lt, axis=1, keepdims=True)
    arg = jnp.min(jnp.where(is_max, idx, C), axis=1, keepdims=True)  # first argmax
    onehot = (idx == arg).astype(jnp.float32)
    logp = ls - jnp.max(ls, axis=1, keepdims=True)
    logp = logp - jnp.log(jnp.sum(jnp.exp(logp), axis=1, keepdims=True))
    per_row = -jnp.sum(onehot * logp, axis=1, keepdims=True)         # (N, 1)
    o_ref[...] = jnp.mean(per_row, axis=0, keepdims=True)


# ---------------------------------------------------------------------------
# pallas_call wrappers
# ---------------------------------------------------------------------------
def conv1x1(x_nchw, w, b_col):
    """NCHW-native 1x1 conv. x: (N,Cin,H,W), w: (Cout,Cin), b_col: (Cout,1)."""
    N, Cin, H, W = x_nchw.shape
    Cout = w.shape[0]
    HW = H * W
    t_hw = _pick_hw_tile(HW)
    out = pl.pallas_call(
        _conv1x1_kernel,
        out_shape=jax.ShapeDtypeStruct((N, Cout, HW), jnp.float32),
        grid=(N, HW // t_hw),
        in_specs=[
            pl.BlockSpec((1, Cin, t_hw), lambda n, j: (n, 0, j)),
            pl.BlockSpec((Cout, Cin), lambda n, j: (0, 0)),
            pl.BlockSpec((Cout, 1), lambda n, j: (0, 0)),
        ],
        out_specs=pl.BlockSpec((1, Cout, t_hw), lambda n, j: (n, 0, j)),
        compiler_params=pltpu.CompilerParams(
            dimension_semantics=("parallel", "parallel"),
            vmem_limit_bytes=_VMEM_LIMIT),
    )(x_nchw.reshape(N, Cin, HW), w, b_col)
    return out.reshape(N, Cout, H, W)


def conv_pool_head(x_nchw, conv_w, conv_b, head_wt, head_b):
    """Fused conv1x1 + global-avg-pool + linear head.
    conv_w: (C, Cin), conv_b: (C,1), head_wt: (K, C) (pre-transposed), head_b: (K,1).
    Returns (features (N,C,H,W), logits (N,K))."""
    N, Cin, H, W = x_nchw.shape
    C = conv_w.shape[0]
    K = head_wt.shape[0]
    HW = H * W
    t_hw = _pick_hw_tile(HW)
    feat, logits = pl.pallas_call(
        functools.partial(_conv_pool_head_kernel, inv_hw=1.0 / HW),
        out_shape=(jax.ShapeDtypeStruct((N, C, HW), jnp.float32),
                   jax.ShapeDtypeStruct((N, K, 1), jnp.float32)),
        grid=(N, HW // t_hw),
        in_specs=[
            pl.BlockSpec((1, Cin, t_hw), lambda n, j: (n, 0, j)),
            pl.BlockSpec((C, Cin), lambda n, j: (0, 0)),
            pl.BlockSpec((C, 1), lambda n, j: (0, 0)),
            pl.BlockSpec((K, C), lambda n, j: (0, 0)),
            pl.BlockSpec((K, 1), lambda n, j: (0, 0)),
        ],
        out_specs=(
            pl.BlockSpec((1, C, t_hw), lambda n, j: (n, 0, j)),
            pl.BlockSpec((1, K, 1), lambda n, j: (n, 0, 0)),
        ),
        scratch_shapes=[pltpu.VMEM((C, 1), jnp.float32)],
        compiler_params=pltpu.CompilerParams(
            dimension_semantics=("parallel", "arbitrary"),
            vmem_limit_bytes=_VMEM_LIMIT),
    )(x_nchw.reshape(N, Cin, HW), conv_w, conv_b, head_wt, head_b)
    return feat.reshape(N, C, H, W), logits.reshape(N, K)


def _attention_loss(feat_t, feat_s):
    N, Ct, H, W = feat_t.shape
    Cs = feat_s.shape[1]
    HW = H * W
    t_hw = _pick_hw_tile(HW)
    per_n = pl.pallas_call(
        _attention_loss_kernel,
        out_shape=jax.ShapeDtypeStruct((N, 1, 1), jnp.float32),
        grid=(N, HW // t_hw),
        in_specs=[
            pl.BlockSpec((1, Ct, t_hw), lambda n, j: (n, 0, j)),
            pl.BlockSpec((1, Cs, t_hw), lambda n, j: (n, 0, j)),
        ],
        out_specs=pl.BlockSpec((1, 1, 1), lambda n, j: (n, 0, 0)),
        scratch_shapes=[pltpu.VMEM((1, 1), jnp.float32),
                        pltpu.VMEM((1, 1), jnp.float32),
                        pltpu.VMEM((1, 1), jnp.float32)],
        compiler_params=pltpu.CompilerParams(
            dimension_semantics=("parallel", "arbitrary"),
            vmem_limit_bytes=_VMEM_LIMIT),
    )(feat_t.reshape(N, Ct, HW), feat_s.reshape(N, Cs, HW))
    return jnp.sum(per_n) / (N * HW)


def _similarity_loss(feat_t, feat_s):
    N = feat_t.shape[0]
    ft = feat_t.reshape(N, -1)
    fs = feat_s.reshape(N, -1)
    d_t, d_s = ft.shape[1], fs.shape[1]
    g = _pick_col_splits(d_t, d_s)
    out = pl.pallas_call(
        _similarity_loss_kernel,
        out_shape=jax.ShapeDtypeStruct((1, 1), jnp.float32),
        grid=(g,),
        in_specs=[
            pl.BlockSpec((N, d_t // g), lambda k: (0, k)),
            pl.BlockSpec((N, d_s // g), lambda k: (0, k)),
        ],
        out_specs=pl.BlockSpec((1, 1), lambda k: (0, 0)),
        scratch_shapes=[pltpu.VMEM((N, N), jnp.float32),
                        pltpu.VMEM((N, N), jnp.float32)],
        compiler_params=pltpu.CompilerParams(
            dimension_semantics=("arbitrary",),
            vmem_limit_bytes=_VMEM_LIMIT),
    )(ft, fs)
    return out[0, 0]


def _linear_mse_loss(feat_t, feat_s):
    assert feat_t.shape == feat_s.shape
    N, C, H, W = feat_t.shape
    HW = H * W
    t_hw = _pick_hw_tile(HW)
    per_n = pl.pallas_call(
        _mse_loss_kernel,
        out_shape=jax.ShapeDtypeStruct((N, 1, 1), jnp.float32),
        grid=(N, HW // t_hw),
        in_specs=[
            pl.BlockSpec((1, C, t_hw), lambda n, j: (n, 0, j)),
            pl.BlockSpec((1, C, t_hw), lambda n, j: (n, 0, j)),
        ],
        out_specs=pl.BlockSpec((1, 1, 1), lambda n, j: (n, 0, 0)),
        compiler_params=pltpu.CompilerParams(
            dimension_semantics=("parallel", "arbitrary"),
            vmem_limit_bytes=_VMEM_LIMIT),
    )(feat_t.reshape(N, C, HW), feat_s.reshape(N, C, HW))
    return jnp.sum(per_n) / (N * C * HW)


def inter_distill_loss(feat_t, feat_s, transform_type):
    """feat_t, feat_s: (N, C, H, W), spatial sizes already matched."""
    if transform_type == "attention":
        return _attention_loss(feat_t, feat_s)
    if transform_type == "similarity":
        return _similarity_loss(feat_t, feat_s)
    if transform_type == "linear":
        return _linear_mse_loss(feat_t, feat_s)
    raise NotImplementedError(transform_type)


def _scalar_call(kernel, *args):
    out = pl.pallas_call(
        kernel,
        out_shape=jax.ShapeDtypeStruct((1, 1), jnp.float32),
        in_specs=[_VMEM_SPEC] * len(args),
        out_specs=_VMEM_SPEC,
        compiler_params=pltpu.CompilerParams(vmem_limit_bytes=_VMEM_LIMIT),
    )(*args)
    return out[0, 0]


def logit_distill_loss(logits_t, logits_s, loss_type, temperature):
    if loss_type == "soft":
        # matches the reference exactly: reduction='sum' * T^2 / logits_s.numel()
        numel = logits_s.shape[0] * logits_s.shape[1]
        t = float(temperature)
        kern = functools.partial(_soft_kl_kernel, inv_t=1.0 / t, scale=(t * t) / numel)
        return _scalar_call(kern, logits_t, logits_s)
    if loss_type == "hard":
        return _scalar_call(_hard_ce_kernel, logits_t, logits_s)
    raise NotImplementedError(loss_type)


# ---------------------------------------------------------------------------
# Synthetic student / teacher models (the wrapper is model-agnostic; forward()
# simply calls student_model(x)).  Each model: fused 1x1 conv + GAP + linear head.
# ---------------------------------------------------------------------------
class TinyConvModel:
    def __init__(self, key, in_ch, feat_ch, num_classes):
        k1, k2, k3, k4 = jax.random.split(key, 4)
        self.conv_w = 0.1 * jax.random.normal(k1, (feat_ch, in_ch), jnp.float32)
        self.conv_b = 0.01 * jax.random.normal(k2, (feat_ch, 1), jnp.float32)
        # head weight stored pre-transposed (K, C) and bias as a column so the fused
        # kernel consumes them with zero per-call reshape/transpose work.
        self.head_w = 0.1 * jax.random.normal(k3, (num_classes, feat_ch), jnp.float32)
        self.head_b = 0.01 * jax.random.normal(k4, (num_classes, 1), jnp.float32)
        self.feature_dims = [feat_ch]
        self.features = None
        self.distill_logits = None

    def __call__(self, x):
        feat, logits = conv_pool_head(x, self.conv_w, self.conv_b, self.head_w, self.head_b)
        self.features = [feat]
        self.distill_logits = logits
        return logits


# ---------------------------------------------------------------------------
# DistillationWrapper (JAX/Pallas)
# ---------------------------------------------------------------------------
class DistillationWrapper:
    def __init__(
        self,
        student_model,
        teacher_model,
        *,
        enable_inter=True,
        inter_transform_type="attention",
        student_idx=(0,),
        teacher_idx=(0,),
        enable_logit=True,
        logit_loss_type="soft",
        temperature=4.0,
        teacher_img_size=16,
        offline=False,
        ft_key=None,
    ):
        assert not offline or not enable_logit
        self.enable_inter = enable_inter
        self.inter_transform_type = inter_transform_type
        self.student_idx = list(student_idx)
        self.teacher_idx = list(teacher_idx)
        self.enable_logit = enable_logit
        self.logit_loss_type = logit_loss_type
        self.temperature = temperature
        self.teacher_img_size = teacher_img_size
        self.offline = offline
        self.student_model = student_model
        self.teacher_model = teacher_model  # frozen (stop_gradient applied on use)
        # TODO(synk): checkpoint loading of teacher weights (torch.load) has no Pallas
        # equivalent; teacher params are deterministic synthetic weights instead.
        self.feature_transforms = []
        if self.inter_transform_type == "linear":
            keys = jax.random.split(
                ft_key if ft_key is not None else jax.random.PRNGKey(42),
                2 * len(self.student_idx),
            )
            for n, (i, j) in enumerate(zip(self.student_idx, self.teacher_idx)):
                cin = self.student_model.feature_dims[i]
                cout = self.teacher_model.feature_dims[j]
                w = 0.1 * jax.random.normal(keys[2 * n], (cout, cin), jnp.float32)
                b = 0.01 * jax.random.normal(keys[2 * n + 1], (cout, 1), jnp.float32)
                self.feature_transforms.append((w, b))

    def __call__(self, x):
        return self.forward(x)

    def forward(self, x):
        # forward() == student_model(x)
        return self.student_model(x)

    def guidance_loss(self, x, offline_feats=None):
        logits_s = self.student_model.distill_logits
        feats_s = self.student_model.features
        if self.offline:
            logits_t = None
            feats_t = offline_feats
        else:
            N, C = x.shape[0], x.shape[1]
            tsz = (self.teacher_img_size, self.teacher_img_size)
            # bilinear(align_corners=False) ~ jax.image.resize 'bilinear'; identity resizes skipped.
            x_t = x if x.shape[-2:] == tsz else jax.image.resize(x, (N, C) + tsz, "bilinear")
            logits_t = jax.lax.stop_gradient(self.teacher_model(x_t))
            feats_t = [jax.lax.stop_gradient(f) for f in self.teacher_model.features]

        loss_inter = jnp.asarray(0.0, jnp.float32)
        if self.enable_inter:
            for i, (idx_t, idx_s) in enumerate(zip(self.teacher_idx, self.student_idx)):
                feat_t = feats_t[idx_t]
                feat_s = feats_s[idx_s]
                if self.inter_transform_type == "linear":
                    w, b = self.feature_transforms[i]
                    feat_s = conv1x1(feat_s, w, b)
                dsize = (
                    max(feat_t.shape[-2], feat_s.shape[-2]),
                    max(feat_t.shape[-1], feat_s.shape[-1]),
                )
                if feat_t.shape[-2:] != dsize:
                    feat_t = jax.image.resize(feat_t, feat_t.shape[:2] + dsize, "bilinear")
                if feat_s.shape[-2:] != dsize:
                    feat_s = jax.image.resize(feat_s, feat_s.shape[:2] + dsize, "bilinear")
                loss_inter = loss_inter + inter_distill_loss(
                    feat_t, feat_s, self.inter_transform_type
                )

        if self.enable_logit:
            loss_logit = logit_distill_loss(
                logits_t, logits_s, self.logit_loss_type, self.temperature
            )
        else:
            loss_logit = jnp.asarray(0.0, jnp.float32)
        return loss_inter, loss_logit


# ---------------------------------------------------------------------------
# main
# ---------------------------------------------------------------------------
if __name__ == "__main__":
    key = jax.random.PRNGKey(0)
    kx, ks, kt, kf = jax.random.split(key, 4)

    N, C_in, H, W = 2, 4, 16, 16
    x = jax.random.normal(kx, (N, C_in, H, W), jnp.float32)

    student = TinyConvModel(ks, in_ch=C_in, feat_ch=8, num_classes=10)
    teacher = TinyConvModel(kt, in_ch=C_in, feat_ch=16, num_classes=10)

    results = []

    # attention-transform inter loss + soft (KL) logit loss
    w_attn = DistillationWrapper(
        student, teacher, inter_transform_type="attention",
        logit_loss_type="soft", temperature=4.0, teacher_img_size=16, ft_key=kf,
    )
    logits = w_attn(x)                     # forward pass (student logits)
    results.append(logits)
    results.extend(w_attn.guidance_loss(x))

    # similarity-transform inter loss + hard (CE) logit loss
    w_sim = DistillationWrapper(
        student, teacher, inter_transform_type="similarity",
        logit_loss_type="hard", teacher_img_size=16, ft_key=kf,
    )
    _ = w_sim(x)
    results.extend(w_sim.guidance_loss(x))

    # linear-transform inter loss (1x1 conv feature adapter) + soft logit loss
    w_lin = DistillationWrapper(
        student, teacher, inter_transform_type="linear",
        logit_loss_type="soft", temperature=2.0, teacher_img_size=16, ft_key=kf,
    )
    _ = w_lin(x)
    results.extend(w_lin.guidance_loss(x))

    jax.block_until_ready(results)
    print("KERNEL_OK")
</pallas_src>

<mosaic_0001>
module attributes {stable_mosaic.version = 11 : i64} {
  func.func @_conv_pool_head_kernel(%arg0: i32, %arg1: i32, %arg2: memref<1x4x256xf32, #tpu.memory_space<vmem>>, %arg3: memref<8x4xf32, #tpu.memory_space<vmem>>, %arg4: memref<8x1xf32, #tpu.memory_space<vmem>>, %arg5: memref<10x8xf32, #tpu.memory_space<vmem>>, %arg6: memref<10x1xf32, #tpu.memory_space<vmem>>, %arg7: memref<1x8x256xf32, #tpu.memory_space<vmem>>, %arg8: memref<1x10x1xf32, #tpu.memory_space<vmem>>, %arg9: memref<8x1xf32, #tpu.memory_space<vmem>>) attributes {dimension_semantics = [#tpu.dimension_semantics<parallel>, #tpu.dimension_semantics<arbitrary>], iteration_bounds = array<i64: 2, 1>, scalar_prefetch = 0 : i64, scratch_operands = 1 : i64, tpu.core_type = #tpu.core_type<tc>, window_params = [{transform_indices = @transform_0, window_bounds = array<i64: 1, 4, 256>}, {pipeline_mode = #tpu.pipeline_mode<synchronous>, transform_indices = @transform_1, window_bounds = array<i64: 8, 4>}, {pipeline_mode = #tpu.pipeline_mode<synchronous>, transform_indices = @transform_2, window_bounds = array<i64: 8, 1>}, {pipeline_mode = #tpu.pipeline_mode<synchronous>, transform_indices = @transform_3, window_bounds = array<i64: 10, 8>}, {pipeline_mode = #tpu.pipeline_mode<synchronous>, transform_indices = @transform_4, window_bounds = array<i64: 10, 1>}, {transform_indices = @transform_5, window_bounds = array<i64: 1, 8, 256>}, {transform_indices = @transform_6, window_bounds = array<i64: 1, 10, 1>}]} {
    %c0_i32 = arith.constant 0 : i32
    %0 = arith.cmpi eq, %arg1, %c0_i32 : i32
    %1 = arith.extui %0 : i1 to i32
    %c0_i32_0 = arith.constant 0 : i32
    %2 = arith.cmpi ne, %1, %c0_i32_0 : i32
    scf.if %2 {
      %cst_17 = arith.constant 0.000000e+00 : f32
      %23 = vector.broadcast %cst_17 : f32 to vector<8x1xf32>
      %c0_18 = arith.constant 0 : index
      %c0_19 = arith.constant 0 : index
      %24 = vector.load %arg9[%c0_18, %c0_19] : memref<8x1xf32, #tpu.memory_space<vmem>>, vector<8x1xf32>
      tpu.vector_store %arg9[%c0_18, %c0_19], %23 {strides = array<i32>} : memref<8x1xf32, #tpu.memory_space<vmem>>, vector<8x1xf32>,
    } else {
    }
    %c0 = arith.constant 0 : index
    %c0_1 = arith.constant 0 : index
    %c0_2 = arith.constant 0 : index
    %3 = vector.load %arg2[%c0, %c0_1, %c0_2] : memref<1x4x256xf32, #tpu.memory_space<vmem>>, vector<1x4x256xf32>
    %4 = vector.shape_cast %3 : vector<1x4x256xf32> to vector<4x256xf32>
    %5 = arith.truncf %4 : vector<4x256xf32> to vector<4x256xbf16>
    %c0_3 = arith.constant 0 : index
    %c0_4 = arith.constant 0 : index
    %6 = vector.load %arg3[%c0_3, %c0_4] : memref<8x4xf32, #tpu.memory_space<vmem>>, vector<8x4xf32>
    %7 = arith.truncf %6 : vector<8x4xf32> to vector<8x4xbf16>
    %cst = arith.constant dense<0.000000e+00> : vector<8x256xf32>
    %8 = tpu.matmul %7, %5, %cst {dimension_numbers = #tpu.dot_dimension_numbers<[1], [0], [0], [1], [0, 0, 1, 1], [], []>} : vector<8x4xbf16>, vector<4x256xbf16>, vector<8x256xf32> -> vector<8x256xf32>
    %c0_5 = arith.constant 0 : index
    %c0_6 = arith.constant 0 : index
    %9 = vector.load %arg4[%c0_5, %c0_6] : memref<8x1xf32, #tpu.memory_space<vmem>>, vector<8x1xf32>
    %10 = vector.broadcast %9 : vector<8x1xf32> to vector<8x256xf32>
    %11 = arith.addf %8, %10 : vector<8x256xf32>
    %c0_7 = arith.constant 0 : index
    %c0_8 = arith.constant 0 : index
    %c0_9 = arith.constant 0 : index
    %12 = vector.load %arg7[%c0_7, %c0_8, %c0_9] : memref<1x8x256xf32, #tpu.memory_space<vmem>>, vector<1x8x256xf32>
    %13 = vector.shape_cast %12 : vector<1x8x256xf32> to vector<8x256xf32>
    %14 = vector.shape_cast %11 : vector<8x256xf32> to vector<1x8x256xf32>
    tpu.vector_store %arg7[%c0_7, %c0_8, %c0_9], %14 {strides = array<i32>} : memref<1x8x256xf32, #tpu.memory_space<vmem>>, vector<1x8x256xf32>,
    %c0_10 = arith.constant 0 : index
    %c0_11 = arith.constant 0 : index
    %15 = vector.load %arg9[%c0_10, %c0_11] : memref<8x1xf32, #tpu.memory_space<vmem>>, vector<8x1xf32>
    %cst_12 = arith.constant dense<0.000000e+00> : vector<8xf32>
    %16 = vector.multi_reduction <add>, %11, %cst_12 [1] : vector<8x256xf32> to vector<8xf32>
    %17 = vector.shape_cast %16 : vector<8xf32> to vector<8x1xf32>
    %18 = arith.addf %15, %17 : vector<8x1xf32>
    %c0_13 = arith.constant 0 : index
    %c0_14 = arith.constant 0 : index
    %19 = vector.load %arg9[%c0_13, %c0_14] : memref<8x1xf32, #tpu.memory_space<vmem>>, vector<8x1xf32>
    tpu.vector_store %arg9[%c0_13, %c0_14], %18 {strides = array<i32>} : memref<8x1xf32, #tpu.memory_space<vmem>>, vector<8x1xf32>,
    %c0_i32_15 = arith.constant 0 : i32
    %20 = arith.cmpi eq, %arg1, %c0_i32_15 : i32
    %21 = arith.extui %20 : i1 to i32
    %c0_i32_16 = arith.constant 0 : i32
    %22 = arith.cmpi ne, %21, %c0_i32_16 : i32
    scf.if %22 {
      %c0_17 = arith.constant 0 : index
      %c0_18 = arith.constant 0 : index
      %23 = vector.load %arg9[%c0_17, %c0_18] : memref<8x1xf32, #tpu.memory_space<vmem>>, vector<8x1xf32>
      %cst_19 = arith.constant 3.906250e-03 : f32
      %24 = vector.broadcast %cst_19 : f32 to vector<8x1xf32>
      %25 = arith.mulf %23, %24 : vector<8x1xf32>
      %c0_20 = arith.constant 0 : index
      %c0_21 = arith.constant 0 : index
      %26 = vector.load %arg5[%c0_20, %c0_21] : memref<10x8xf32, #tpu.memory_space<vmem>>, vector<10x8xf32>
      %cst_22 = arith.constant dense<0.000000e+00> : vector<10x1xf32>
      %27 = tpu.matmul %26, %25, %cst_22 {dimension_numbers = #tpu.dot_dimension_numbers<[1], [0], [0], [1], [0, 0, 1, 1], [], []>} : vector<10x8xf32>, vector<8x1xf32>, vector<10x1xf32> -> vector<10x1xf32>
      %c0_23 = arith.constant 0 : index
      %c0_24 = arith.constant 0 : index
      %28 = vector.load %arg6[%c0_23, %c0_24] : memref<10x1xf32, #tpu.memory_space<vmem>>, vector<10x1xf32>
      %29 = arith.addf %27, %28 : vector<10x1xf32>
      %c0_25 = arith.constant 0 : index
      %c0_26 = arith.constant 0 : index
      %c0_27 = arith.constant 0 : index
      %30 = vector.load %arg8[%c0_25, %c0_26, %c0_27] : memref<1x10x1xf32, #tpu.memory_space<vmem>>, vector<1x10x1xf32>
      %31 = vector.shape_cast %30 : vector<1x10x1xf32> to vector<10x1xf32>
      %32 = vector.shape_cast %29 : vector<10x1xf32> to vector<1x10x1xf32>
      tpu.vector_store %arg8[%c0_25, %c0_26, %c0_27], %32 {strides = array<i32>} : memref<1x10x1xf32, #tpu.memory_space<vmem>>, vector<1x10x1xf32>,
    } else {
    }
    return
  }
  func.func @transform_0(%arg0: i32, %arg1: i32) -> (i32, i32, i32) {
    %c0_i32 = arith.constant 0 : i32
    %c0_i32_0 = arith.constant 0 : i32
    return %arg0, %c0_i32, %arg1 : i32, i32, i32
  }
  func.func @transform_1(%arg0: i32, %arg1: i32) -> (i32, i32) {
    %c0_i32 = arith.constant 0 : i32
    %c0_i32_0 = arith.constant 0 : i32
    %c0_i32_1 = arith.constant 0 : i32
    return %c0_i32, %c0_i32_0 : i32, i32
  }
  func.func @transform_2(%arg0: i32, %arg1: i32) -> (i32, i32) {
    %c0_i32 = arith.constant 0 : i32
    %c0_i32_0 = arith.constant 0 : i32
    %c0_i32_1 = arith.constant 0 : i32
    return %c0_i32, %c0_i32_0 : i32, i32
  }
  func.func @transform_3(%arg0: i32, %arg1: i32) -> (i32, i32) {
    %c0_i32 = arith.constant 0 : i32
    %c0_i32_0 = arith.constant 0 : i32
    %c0_i32_1 = arith.constant 0 : i32
    return %c0_i32, %c0_i32_0 : i32, i32
  }
  func.func @transform_4(%arg0: i32, %arg1: i32) -> (i32, i32) {
    %c0_i32 = arith.constant 0 : i32
    %c0_i32_0 = arith.constant 0 : i32
    %c0_i32_1 = arith.constant 0 : i32
    return %c0_i32, %c0_i32_0 : i32, i32
  }
  func.func @transform_5(%arg0: i32, %arg1: i32) -> (i32, i32, i32) {
    %c0_i32 = arith.constant 0 : i32
    %c0_i32_0 = arith.constant 0 : i32
    return %arg0, %c0_i32, %arg1 : i32, i32, i32
  }
  func.func @transform_6(%arg0: i32, %arg1: i32) -> (i32, i32, i32) {
    %c0_i32 = arith.constant 0 : i32
    %c0_i32_0 = arith.constant 0 : i32
    %c0_i32_1 = arith.constant 0 : i32
    return %arg0, %c0_i32, %c0_i32_0 : i32, i32, i32
  }
}

</mosaic_0001>

<bundles_post_ra>
// kernel: tpu_custom_call.1
= control target key start
LH: loop header
LB: loop body
LE: loop exit
PB: predicated region body
PF: predicated region fallthrough
CT: control target
= control target key end

     0   :  { %s860_s0 = inlined_call_operand.vmem [shape: f32[2,4,256], index: 0, kind: input, shape index: {}]   ;;  %s861_s1 = inlined_call_operand.vmem [shape: f32[8,4], index: 1, kind: input, shape index: {}]   ;;  %s862_s2 = inlined_call_operand.vmem [shape: f32[8,1], index: 2, kind: input, shape index: {}]   ;;  %s863_s3 = inlined_call_operand.vmem [shape: f32[10,8], index: 3, kind: input, shape index: {}]   ;;  %s864_s4 = inlined_call_operand.vmem [shape: f32[10,1], index: 4, kind: input, shape index: {}]   ;;  %s865_s5 = inlined_call_operand.hbm [shape: f32[2,8,256], index: 5, kind: output, shape index: {0}]   ;;  %s866_s6 = inlined_call_operand.vmem [shape: f32[2,10,1], index: 6, kind: output, shape index: {1}]  }
   0x1   :  { %867 = sst [smem:[#allocation6_spill]] %s860_s0 }
   0x2   :  { %12 = vsyncpa [#allocation4], 0 }
   0x3   :  { %14 = vsyncpa [#allocation4 + $0x1], 0  ;;  %s731_s21 = smov 0   ;;  %s733_s22 = smov 0  }
   0x4   :  { %s735_s23 = smov 0   ;;  %s737_s24 = smov 0  }
   0x5   :  { %s739_s25 = smov 0   ;;  %s741_s26 = smov 0  }
   0x6 LB: > { %s534_s27 = sadd.s32 4294967295, %s692_s26   ;;  %s535_s28 = sadd.s32 4294967294, %s692_s26   ;;  %s692_s26 = sphi %s741_s26, %s20_s26   ;;  %s688_s25 = sphi %s739_s25, %s875_s25   ;;  %s684_s24 = sphi %s737_s24, %s874_s24   ;;  %s680_s23 = sphi %s735_s23, %s873_s23   ;;  %s676_s22 = sphi %s733_s22, %s872_s22   ;;  %s672_s21 = sphi %s731_s21, %s871_s21  }
   0x7   : > { %s32_s29 = sadd.s32 1, %s688_s25  ;;  %s153_s30 = sadd.s32 1, %s680_s23 }
   0x8   : > { %p34_p0 = scmp.ge.s32.totalorder %s32_s29, 2  ;;  %p163_p1 = scmp.ne.s32.totalorder %s680_s23, %s676_s22 }
   0x9   : > { %p164_p2 = scmp.eq.s32.totalorder %s534_s27, 1  ;;  %p169_p3 = scmp.ne.s32.totalorder %s676_s22, %s672_s21 }
   0xa   : > { %s877_s29 = smov (%p34_p0, %s32_s29), 0  ;;  %p170_p5 = scmp.eq.s32.totalorder %s535_s28, 1 }
   0xb   : > { %p771_p4 = por %p164_p2, %p163_p1  ;;  %s148_s8 = ssub.s32 %s688_s25, %s877_s29 }
   0xc   : > { %p538_p6 = scmp.ge.s32.totalorder %s692_s26, 1  ;;  %p151_p7 = scmp.eq.s32.totalorder %s148_s8, 0 }
   0xd   : > { %p778_p8 = por %p170_p5, %p169_p3  ;;  %p239_p9 = scmp.lt.s32.totalorder %s692_s26, 3 }
   0xe   : > { %s784_s10 = scalar_select %p151_p7, %s680_s23, %s153_s30  }
   0xf   : > { %p240_p10 = pnand %p538_p6, %p239_p9 }
  0x10   : > { %p279_p11 = scmp.lt.s32.totalorder (!%p240_p10), %s684_s24, 1  ;;  %s870_s0 = sld [smem:[#allocation6_spill]] (!%p240_p10) }
  0x11   : > { %243 = sbr.rel (%p240_p10) target bundleno = 443 (0x1bb), region = 40  ;;  %s268_s20 = sand.u32 (!%p240_p10), 1, %s676_s22  }
  0x12   : > { %s539_s27 = sshll.u32 (!%p240_p10), %s268_s20, 4 }
  0x13   : > { %s270_s28 = scalar_lea.vmem (!%p240_p10), [#allocation3], %s539_s27  ;;  %s407_s27 = scalar_lea.sflag (!%p240_p10), [#allocation4], %s268_s20 }
  0x14   : > { %s427_s18 = sshll.u32 (!%p240_p10), %s270_s28, 4  ;;  %s428_s18 = int_to_ptr.vmem [resolvable:$true] %s427_s18 }
  0x16   : > { %v312_v0 = vld [vmem:[%s862_s2] sm:$0xff]  ;;  %v694_v1 = vmov 0   ;;  %s791_s13 = scalar_select %p279_p11, %s684_s24, 1  ;;  %vm322_vm0 = vcmask 1041408   ;;  %vm318_vm1 = vcmask 31744   ;;  %vm299_vm2 = vcmask 7168  }
  0x17   : > { %613 = vset.pattern.permute.xlu0 %v694_v1  ;;  %v310_v3 = vld [vmem:[%s861_s1] sm:$0xff]  ;;  %v695_v11 = vmov 0.0   ;;  %vm373_vm3 = vcmask 64512   ;;  %v370_v26 = vld [vmem:[%s863_s3 + $0x8] sm:$0x3] }
  0x18   : > { %315 = vperm.xlu0 %613, %v312_v0   ;;  %s553_s14 = sshll.u32 %s791_s13, 3  ;;  %v311_v10 = vpack.c.bf16 %v310_v3, %v310_v3  ;;  %300 = vst.msk [vmem:[#allocation2] sm:$0xff] %vm299_vm2, %v695_v11  ;;  %v369_v25 = vld [vmem:[%s863_s3] sm:$0xff] }
  0x19   : > { %s286_s17 = scalar_lea.vmem %s870_s0, %s553_s14  ;;  %s555_s14 = sshll.u32 %s684_s24, 4 }
  0x1a   : > { %v301_v2 = vld [vmem:[%s286_s17] sm:$0xff]  ;;  %s425_s17 = scalar_lea.hbm %s865_s5, %s555_s14  ;;  %s634_s24 = scalar_lea.hbm %s865_s5, 32 }
  0x1b   : > { %303 = vst [vmem:[#allocation1] ss:$2 sm:$0xff] %v301_v2  ;;  %s429_s19 = sshll.u32 %s425_s17, 4  ;;  %s430_s19 = int_to_ptr.hbm [resolvable:$true] %s429_s19 }
  0x1c   : > { %s628_s30 = sshra.s32 %s430_s19, 4  ;;  %s629_s30 = int_to_ptr.hbm [resolvable:$true] %s628_s30 }
  0x1d   : > { %s630_s8 = scalar_lea.hbm %s629_s30, 16  ;;  %p635_p1 = scmp.lt.s32.totalorder %s629_s30, %s865_s5 }
  0x1e   : > { %p631_p12 = scmp.ne.s32.totalorder %s629_s30, %s630_s8  ;;  %p636_p2 = scmp.lt.s32.totalorder %s634_s24, %s630_s8 }
  0x1f   : > { %v357_v20 = vld [vmem:[#allocation2] sm:$0xff] }
  0x20   : > { %p632_p13 = pnand %p631_p12, %p771_p4  ;;  %p637_p3 = por %p636_p2, %p635_p1 }
  0x22   : > { %v304_v4 = vld.sshfl [vmem:[#allocation1] sm:$0xff pattern:$0x75316420]  ;;  %v305_v5 = vld.sshfl [vmem:[#allocation1 + $0x8] sm:$0xff pattern:$0x75316420]  ;;  %p633_p0 = pneg %p632_p13 }
  0x23   : > { %v308_v6 = vpack.c.bf16 %v304_v4, %v304_v4  ;;  %v309_v7 = vpack.c.bf16 %v305_v5, %v305_v5 }
  0x24   : > { %p638_p5 = pnand %p637_p3, %p633_p0 }
  0x25   : > { %v324_v8 = vsel %vm322_vm0, %v308_v6, 0  ;;  %v327_v9 = vsel %vm322_vm0, %v309_v7, 0 }
  0x26   : > { %336 = vmatpush.bf16.msra.mxu0 %v324_v8  ;;  %349 = vmatpush.bf16.msra.mxu1 %v327_v9 }
  0x29   : > { %544 = vmatmul.msk.bf16.vlgmr.msra.gmra.mxu0 %vm318_vm1, %v311_v10  ;;  %545 = vmatmul.msk.bf16.vlgmr.msra.gmra.mxu1 %vm318_vm1, %v311_v10 }
  0x8a   : > { %v316_v12 = vpop.permute.xlu0 %315 }
  0xa6   : > { %v338_v13 = vpop.f32.mrf.mxu0  ;;  %v351_v14 = vpop.f32.mrf.mxu1 }
  0xa7   : > { %v339_v15 = vadd.f32 %v338_v13, %v316_v12  ;;  %v352_v16 = vadd.f32 %v351_v14, %v316_v12 }
  0xa9   : > { %355 = vst [vmem:[%s270_s28] sm:$0xff] %v339_v15  ;;  %v358_v17 = vadd.f32 %v352_v16, %v339_v15 }
  0xaa   : > { %356 = vst [vmem:[%s270_s28 + $0x8] sm:$0xff] %v352_v16 }
  0xab   : > { %359 = vadd.xlane.f32.xlu0 %v358_v17 }
  0xae   : > { %v340_v18 = vpop.f32.mrf.mxu0  ;;  %v353_v19 = vpop.f32.mrf.mxu1 }
 0x11e   : > { %v360_v21 = vpop.xlane.xlu0 %359 }
 0x11f   : > { %v361_v22 = vadd.f32 %v360_v21, %v357_v20 }
 0x121   : > { %363 = vst.msk [vmem:[#allocation2] sm:$0xff] %vm299_vm2, %v361_v22 }
 0x128   : > { %v367_v23 = vld [vmem:[#allocation2] sm:$0xff] }
 0x129   : > { %v368_v24 = vmul.f32 0.00390625, %v367_v23 }
 0x12b   : > { %395 = vmatpush.msra.mxu2 %v368_v24 }
 0x12c   : > { %546 = vmatmul.msk.f32.vlgmr.msra.gmra.mxu2 %vm373_vm3, %v369_v25 }
 0x134   : > { %547 = vmatmul.msk.f32.gmra.mxu2 %vm373_vm3, %v370_v26 }
 0x135   : > { %641 = shalt.err (!%p638_p5)
}
 0x136   : > { %556 = dma.vmem_to_hbm [thread:$0]  (%p771_p4), %s428_s18, 256, %s430_s19, %s407_s27   ;;  %v371_v27 = vld [vmem:[%s864_s4] sm:$0xff]  ;;  %v372_v30 = vld [vmem:[%s864_s4 + $0x8] sm:$0x3]  ;;  %vm404_vm4 = vcmask 1024  }
 0x137   : > { %s554_s20 = sshll.u32 %s791_s13, 4 }
 0x138   : > { %s293_s11 = scalar_lea.vmem %s866_s6, %s554_s20 }
 0x1af   : > { %v397_v28 = vpop.f32.mrf.mxu2 }
 0x1b0   : > { %v398_v29 = vadd.f32 %v397_v28, %v371_v27 }
 0x1b2   : > { %403 = vst.msk [vmem:[%s293_s11] sm:$0xff] %vm299_vm2, %v398_v29 }
 0x1b7   : > { %v400_v31 = vpop.f32.mrf.mxu2 }
 0x1b8   : > { %v401_v32 = vadd.f32 %v400_v31, %v372_v30 }
 0x1ba   : > { %405 = vst.msk [vmem:[%s293_s11 + $0x8] sm:$0x3] %vm404_vm4, %v401_v32 }
 0x1bb PF: > { %p562_p4 = scmp.ge.s32.totalorder %s692_s26, 2  ;;  %s444_s7 = sand.u32 1, %s672_s21  }
 0x1bc   : > { %s445_s13 = scalar_lea.sflag [#allocation4], %s444_s7 }
 0x1bd   : > { %p559_p6 = pnand %p562_p4, %p778_p8 }
 0x1bf   : > { %p560_p7 = pneg %p559_p6 }
 0x1c1   : > { %667 = dma.done.wait (%p560_p7), %s445_s13, 256  }
 0x1c2   : > { %669 = vsyncadd (%p560_p7), %s445_s13, 4294967040  ;;  %s20_s26 = sadd.s32 1, %s692_s26   ;;  %s871_s21 = smov %s676_s22 }
 0x1c3   : > { %p17_p9 = scmp.ge.s32.totalorder %s20_s26, 4   ;;  %s872_s22 = smov %s680_s23 }
 0x1c4   : > { %s873_s23 = smov %s784_s10  ;;  %s874_s24 = smov %s688_s25 }
 0x1c5   : > { %s875_s25 = smov %s877_s29  ;;  %19 = sbr.rel (!%p17_p9) target bundleno = 6 (0x6), region = 95 }
 0x1ca   :  { %459 = vsyncpa [#allocation4], 1 }
 0x1cb   :  { %461 = vsyncpa [#allocation4 + $0x1], 1 }

</bundles_post_ra>
